<compile_context>
chip_gen: v6e
topology: v6e:2x2x1
jax: 0.10.0
libtpu: 0.0.40
codegen_flags: <defaults>
</compile_context>

<pallas_src>
import functools

import jax
import jax.numpy as jnp
from jax.experimental import pallas as pl
from jax.experimental.pallas import tpu as pltpu


def _pos_embed_kernel(x_ref, abs_ref, rel_ref, o_ref, *, bblk):
    # x_ref  : (Bblk, Sblk, D)   streaming input slab (aliased with output in HBM)
    # abs_ref: (B_pad, 1, D)     all gathered absolute rows, VMEM-resident
    # rel_ref: (Sblk, D)         relative_pos_embed rows for this seq slab
    start = pl.multiple_of(pl.program_id(1) * bblk, bblk)
    abs_blk = abs_ref[pl.ds(start, bblk)]                 # (Bblk, 1, D)
    # (Bblk,Sblk,D) + (Bblk,1,D) + (1,Sblk,D): two VPU adds, fully hidden under DMA.
    o_ref[...] = x_ref[...] + abs_blk + rel_ref[...][None, :, :]


def positional_embedding(x, timesteps, absolute_pos_embed, relative_pos_embed,
                         *, target_block_bytes=8 * 1024 * 1024):
    """x: (B, S, D), timesteps: (B,) int32. Returns (B, S, D) with x.dtype."""
    B, S, D = x.shape
    rel_rows = relative_pos_embed.shape[0]
    if S > rel_rows:
        raise ValueError(f"seq_len={S} exceeds relative_pos_embed rows={rel_rows}")

    # Tiny gather / slice stay in XLA; the kernel only streams dense slabs.
    # TODO(synk): abs/rel are cast to x.dtype; PyTorch type promotion would instead
    # return the promoted dtype if x were lower precision than the tables.
    abs_rows = absolute_pos_embed[timesteps].reshape(B, 1, D).astype(x.dtype)  # (B,1,D)
    rel = relative_pos_embed[:S].astype(x.dtype)                               # (S,D)

    # Lane-density guard: keep the last block dim a multiple of 128 so stores are
    # unmasked. (No-op for the usual d_model multiples of 128.)
    Dp = ((D + 127) // 128) * 128 if D > 0 else 128
    if Dp != D:
        x = jnp.pad(x, ((0, 0), (0, 0), (0, Dp - D)))
        abs_rows = jnp.pad(abs_rows, ((0, 0), (0, 0), (0, Dp - D)))
        rel = jnp.pad(rel, ((0, 0), (0, Dp - D)))

    itemsize = jnp.dtype(x.dtype).itemsize
    sublane = max(8, 32 // itemsize)      # 8 rows f32, 16 bf16, 32 int8/fp8
    row_bytes = Dp * itemsize
    target_block_bytes = min(int(target_block_bytes), 10 * 1024 * 1024)

    # ---- choose (Sblk, Bblk) so each grid step streams a large slab of x --------
    if S * row_bytes <= target_block_bytes:
        Sblk = S                          # whole sequence per step (block == full dim)
    else:
        Sblk = max(sublane, (target_block_bytes // row_bytes) // sublane * sublane)
        Sblk = min(Sblk, S)
    Bblk = int(max(1, min(B, target_block_bytes // max(1, Sblk * row_bytes))))

    # v7x: guarantee >= 2 steps on a "parallel" axis so both TensorCores get work
    # (neutral on single-TC v5e/v6e).
    if pl.cdiv(S, Sblk) * pl.cdiv(B, Bblk) == 1:
        if B >= 2:
            Bblk = pl.cdiv(B, 2)
        elif S >= 2 * sublane:
            Sblk = max(sublane, pl.cdiv(pl.cdiv(S, 2), sublane) * sublane)

    n_s = pl.cdiv(S, Sblk)
    n_b = pl.cdiv(B, Bblk)
    grid = (n_s, n_b)                     # (seq blocks, batch blocks); batch inner

    # abs rows are VMEM-resident and sliced dynamically in-kernel: pad the row count
    # to a multiple of Bblk so the last batch block never reads out of bounds.
    B_pad = n_b * Bblk
    if B_pad != B:
        abs_rows = jnp.pad(abs_rows, ((0, B_pad - B), (0, 0), (0, 0)))

    # VMEM budget: double-buffered x + out slabs, rel slab, resident abs + headroom.
    block_bytes = Bblk * Sblk * row_bytes
    need = 4 * block_bytes + 2 * Sblk * row_bytes + 2 * B_pad * row_bytes + (2 << 20)
    vmem_limit = int(min(48 * 1024 * 1024, max(need, 32 * 1024 * 1024)))

    kernel = functools.partial(_pos_embed_kernel, bblk=Bblk)

    grid_spec = pltpu.PrefetchScalarGridSpec(
        num_scalar_prefetch=0,
        grid=grid,
        in_specs=[
            pl.BlockSpec((Bblk, Sblk, Dp), lambda s, b: (b, s, 0)),  # x slab
            pl.BlockSpec((B_pad, 1, Dp),   lambda s, b: (0, 0, 0)),  # abs: resident
            pl.BlockSpec((Sblk, Dp),       lambda s, b: (s, 0)),     # rel[:S] slab
        ],
        out_specs=pl.BlockSpec((Bblk, Sblk, Dp), lambda s, b: (b, s, 0)),
    )

    out = pl.pallas_call(
        kernel,
        out_shape=jax.ShapeDtypeStruct((B, S, Dp), x.dtype),
        grid_spec=grid_spec,
        input_output_aliases={0: 0},      # in-place add into x's HBM buffer
        compiler_params=pltpu.CompilerParams(
            dimension_semantics=("parallel", "parallel"),
            vmem_limit_bytes=vmem_limit),
    )(x, abs_rows, rel)

    if Dp != D:
        out = out[..., :D]
    return out


if __name__ == "__main__":
    # Module config (small, consistent with the forward pass).
    B, S, D = 2, 8, 128
    max_timestamp = 16
    context_length = 8          # relative table has context_length*3 + 1 = 25 rows

    key = jax.random.PRNGKey(0)
    k1, k2, k3, k4 = jax.random.split(key, 4)

    x = jax.random.normal(k1, (B, S, D), dtype=jnp.float32)
    # PyTorch inits the embedding tables to zeros; use deterministic random values so
    # the broadcast add is actually exercised.
    absolute_pos_embed = jax.random.normal(k2, (max_timestamp + 1, D), dtype=jnp.float32)
    relative_pos_embed = jax.random.normal(k3, (context_length * 3 + 1, D), dtype=jnp.float32)
    timesteps = jax.random.randint(k4, (B,), 0, max_timestamp + 1, dtype=jnp.int32)

    # Pure-JAX reference matching the PyTorch semantics exactly (computed before the
    # kernel since the pallas_call may alias/donate x's buffer).
    ref = x + (absolute_pos_embed[timesteps].reshape(-1, 1, D) + relative_pos_embed[:S])
    ref = jax.block_until_ready(ref)

    out = positional_embedding(x, timesteps, absolute_pos_embed, relative_pos_embed)
    out = jax.block_until_ready(out)

    assert out.shape == ref.shape and out.dtype == ref.dtype
    assert jnp.allclose(out, ref, atol=1e-6), "mismatch vs reference"
    print("KERNEL_OK")
</pallas_src>

<mosaic_0001>
module attributes {stable_mosaic.version = 11 : i64} {
  func.func @_pos_embed_kernel(%arg0: i32, %arg1: i32, %arg2: memref<1x8x128xf32, #tpu.memory_space<vmem>>, %arg3: memref<2x1x128xf32, #tpu.memory_space<vmem>>, %arg4: memref<8x128xf32, #tpu.memory_space<vmem>>, %arg5: memref<1x8x128xf32, #tpu.memory_space<vmem>>) attributes {dimension_semantics = [#tpu.dimension_semantics<parallel>, #tpu.dimension_semantics<parallel>], iteration_bounds = array<i64: 1, 2>, scalar_prefetch = 0 : i64, scratch_operands = 0 : i64, tpu.core_type = #tpu.core_type<tc>, window_params = [{transform_indices = @transform_0, window_bounds = array<i64: 1, 8, 128>}, {pipeline_mode = #tpu.pipeline_mode<synchronous>, transform_indices = @transform_1, window_bounds = array<i64: 2, 1, 128>}, {transform_indices = @transform_2, window_bounds = array<i64: 8, 128>}, {transform_indices = @transform_3, window_bounds = array<i64: 1, 8, 128>}]} {
    %c1_i32 = arith.constant 1 : i32
    %0 = arith.muli %arg1, %c1_i32 : i32
    %1 = tpu.assume_multiple %0, 1 : i32
    %2 = arith.index_cast %1 : i32 to index
    %c0 = arith.constant 0 : index
    %c0_0 = arith.constant 0 : index
    %3 = vector.load %arg3[%2, %c0, %c0_0] : memref<2x1x128xf32, #tpu.memory_space<vmem>>, vector<1x1x128xf32>
    %c0_1 = arith.constant 0 : index
    %c0_2 = arith.constant 0 : index
    %c0_3 = arith.constant 0 : index
    %4 = vector.load %arg2[%c0_1, %c0_2, %c0_3] : memref<1x8x128xf32, #tpu.memory_space<vmem>>, vector<1x8x128xf32>
    %5 = vector.broadcast %3 : vector<1x1x128xf32> to vector<1x8x128xf32>
    %6 = arith.addf %4, %5 : vector<1x8x128xf32>
    %c0_4 = arith.constant 0 : index
    %c0_5 = arith.constant 0 : index
    %7 = vector.load %arg4[%c0_4, %c0_5] : memref<8x128xf32, #tpu.memory_space<vmem>>, vector<8x128xf32>
    %8 = vector.shape_cast %7 : vector<8x128xf32> to vector<1x8x128xf32>
    %9 = arith.addf %6, %8 : vector<1x8x128xf32>
    %c0_6 = arith.constant 0 : index
    %c0_7 = arith.constant 0 : index
    %c0_8 = arith.constant 0 : index
    %10 = vector.load %arg5[%c0_6, %c0_7, %c0_8] : memref<1x8x128xf32, #tpu.memory_space<vmem>>, vector<1x8x128xf32>
    tpu.vector_store %arg5[%c0_6, %c0_7, %c0_8], %9 {strides = array<i32>} : memref<1x8x128xf32, #tpu.memory_space<vmem>>, vector<1x8x128xf32>,
    return
  }
  func.func @transform_0(%arg0: i32, %arg1: i32) -> (i32, i32, i32) {
    %c0_i32 = arith.constant 0 : i32
    %c0_i32_0 = arith.constant 0 : i32
    return %arg1, %arg0, %c0_i32 : i32, i32, i32
  }
  func.func @transform_1(%arg0: i32, %arg1: i32) -> (i32, i32, i32) {
    %c0_i32 = arith.constant 0 : i32
    %c0_i32_0 = arith.constant 0 : i32
    %c0_i32_1 = arith.constant 0 : i32
    %c0_i32_2 = arith.constant 0 : i32
    return %c0_i32, %c0_i32_0, %c0_i32_1 : i32, i32, i32
  }
  func.func @transform_2(%arg0: i32, %arg1: i32) -> (i32, i32) {
    %c0_i32 = arith.constant 0 : i32
    %c0_i32_0 = arith.constant 0 : i32
    return %arg0, %c0_i32 : i32, i32
  }
  func.func @transform_3(%arg0: i32, %arg1: i32) -> (i32, i32, i32) {
    %c0_i32 = arith.constant 0 : i32
    %c0_i32_0 = arith.constant 0 : i32
    return %arg1, %arg0, %c0_i32 : i32, i32, i32
  }
}

</mosaic_0001>

<bundles_post_ra>
// kernel: tpu_custom_call.1
= control target key start
LH: loop header
LB: loop body
LE: loop exit
PB: predicated region body
PF: predicated region fallthrough
CT: control target
= control target key end

     0   :  { %8 = vsyncpa [#allocation3], 0  ;;  %s694_s0 = inlined_call_operand.hbm [shape: f32[2,8,128], index: 0, kind: input, shape index: {}, may-alias: {0,3}]   ;;  %s695_s1 = inlined_call_operand.vmem [shape: f32[2,1,128], index: 1, kind: input, shape index: {}]   ;;  %s696_s2 = inlined_call_operand.vmem [shape: f32[8,128], index: 2, kind: input, shape index: {}]   ;;  %s697_s3 = inlined_call_operand.hbm [shape: f32[2,8,128], index: 3, kind: output, shape index: {}, may-alias: {0,3}]  }
   0x1   :  { %10 = vsyncpa [#allocation3 + $0x1], 0 }
   0x2   :  { %11 = vsyncpa [#allocation4], 0 }
   0x3   :  { %13 = vsyncpa [#allocation4 + $0x1], 0  ;;  %s553_s12 = smov 0   ;;  %s555_s13 = smov 0  }
   0x4   :  { %s557_s14 = smov 0   ;;  %s559_s15 = smov 0  }
   0x5   :  { %s561_s16 = smov 0   ;;  %s563_s17 = smov 0  }
   0x6 LB: > { %s344_s18 = sadd.s32 4294967295, %s529_s17   ;;  %s345_s19 = sadd.s32 4294967294, %s529_s17   ;;  %s529_s17 = sphi %s563_s17, %s19_s17   ;;  %s525_s16 = sphi %s561_s16, %s709_s16   ;;  %s521_s15 = sphi %s559_s15, %s708_s15   ;;  %s517_s14 = sphi %s557_s14, %s707_s14   ;;  %s513_s13 = sphi %s555_s13, %s706_s13   ;;  %s509_s12 = sphi %s553_s12, %s705_s12  }
   0x7   : > { %s28_s20 = sadd.s32 1, %s525_s16  ;;  %s40_s21 = sadd.s32 1, %s517_s14 }
   0x8   : > { %p29_p0 = scmp.ge.s32.totalorder %s28_s20, 2  ;;  %p47_p1 = scmp.ne.s32.totalorder %s517_s14, %s513_s13 }
   0x9   : > { %p48_p2 = scmp.eq.s32.totalorder %s529_s17, 0  ;;  %p53_p3 = scmp.ne.s32.totalorder %s513_s13, %s509_s12 }
   0xa   : > { %s711_s20 = smov (%p29_p0, %s28_s20), 0  ;;  %p54_p5 = scmp.eq.s32.totalorder %s344_s18, 0 }
   0xb   : > { %p594_p4 = por %p48_p2, %p47_p1  ;;  %s35_s23 = ssub.s32 %s525_s16, %s711_s20 }
   0xc   : > { %p126_p6 = scmp.eq.s32.totalorder %s344_s18, 1  ;;  %p38_p7 = scmp.eq.s32.totalorder %s35_s23, 0 }
   0xd   : > { %p600_p8 = por %p54_p5, %p53_p3  ;;  %p132_p10 = scmp.eq.s32.totalorder %s345_s19, 1 }
   0xe   : > { %p604_p9 = por %p126_p6, %p47_p1  ;;  %p371_p13 = scmp.lt.s32.totalorder %s529_s17, 2 }
   0xf   : > { %s609_s26 = scalar_select %p38_p7, %s517_s14, %s40_s21  }
  0x10   : > { %p611_p11 = por %p132_p10, %p53_p3  ;;  %s162_s28 = sand.u32 1, %s517_s14  }
  0x11   : > { %s349_s29 = sshll.u32 %s162_s28, 3  ;;  %s350_s30 = sshll.u32 %s525_s16, 7 }
  0x12   : > { %s701_s27 = scalar_select %p611_p11, 1, 0 }
  0x13   : > { %s172_s6 = scalar_lea.hbm %s694_s0, %s350_s30  ;;  %s166_s7 = scalar_lea.vmem [#allocation2], %s349_s29 }
  0x14   : > { %s174_s8 = sshll.u32 %s166_s7, 4  ;;  %p624_p0 = pnand %p371_p13, %p594_p4  ;;  %s175_s8 = int_to_ptr.vmem [resolvable:$true] %s174_s8 }
  0x15   : > { %p351_p1 = scmp.ge.s32.totalorder %s529_s17, 1  ;;  %p179_p2 = scmp.lt.s32.totalorder %s529_s17, 3 }
  0x16   : > { %s163_s10 = scalar_lea.sflag [#allocation3], %s162_s28  ;;  %p423_p3 = pneg %p624_p0 }
  0x17   : > { %s434_s11 = scalar_lea.vmem %s175_s8, 128  ;;  %s531_s18 = smov [#allocation2]  }
  0x18   : > { %p435_p5 = scmp.ne.s32.totalorder %s175_s8, %s434_s11  ;;  %s439_s19 = sshll.u32 %s531_s18, 4  ;;  %s440_s19 = int_to_ptr.vmem [resolvable:$false] %s439_s19 }
  0x19   : > { %s441_s21 = scalar_lea.vmem %s440_s19, 256  ;;  %p442_p10 = scmp.lt.s32.totalorder %s175_s8, %s440_s19 }
  0x1a   : > { %p437_p6 = pnand %p435_p5, %p423_p3  ;;  %p443_p12 = scmp.lt.s32.totalorder %s441_s21, %s434_s11 }
  0x1c   : > { %p438_p7 = pneg %p437_p6  ;;  %p444_p4 = por %p443_p12, %p442_p10 }
  0x1e   : > { %p445_p13 = pnand %p444_p4, %p438_p7 }
  0x20   : > { %448 = shalt.err (!%p445_p13)
}
  0x21   : > { %366 = dma.hbm_to_vmem [thread:$0]  (!%p624_p0), %s172_s6, 128, %s175_s8, %s163_s10  }
  0x22   : > { %p180_p11 = pnand %p351_p1, %p179_p2 }
  0x23   : > { %s639_s22 = sand.u32 (!%p180_p11), 1, %s513_s13  }
  0x24   : > { %183 = sbr.rel (%p180_p11) target bundleno = 66 (0x42), region = 32  ;;  %s352_s23 = sshll.u32 (!%p180_p11), %s639_s22, 3 }
  0x25   : > { %s186_s28 = scalar_lea.sflag (!%p180_p11), [#allocation3], %s639_s22  ;;  %s189_s29 = scalar_lea.vmem (!%p180_p11), [#allocation2], %s352_s23 }
  0x29   : > { %500 = dma.done.wait (%p600_p8), %s186_s28, 128  }
  0x2a   : > { %502 = vsyncadd (%p600_p8), %s186_s28, 4294967168  ;;  %s220_s5 = scalar_lea.vmem %s695_s1, %s521_s15  ;;  %v222_v1 = vld [vmem:[%s189_s29] sm:$0xff]  ;;  %s215_s8 = scalar_lea.vmem [#allocation5], %s352_s23 }
  0x2b   : > { %v354_v0 = vld [vmem:[%s220_s5] ss:$0 sm:$0xff]  ;;  %s248_s9 = sshll.u32 %s215_s8, 4  ;;  %s356_s10 = sshll.u32 %s521_s15, 7  ;;  %s249_s9 = int_to_ptr.vmem [resolvable:$true] %s248_s9 }
  0x2c   : > { %v230_v2 = vld [vmem:[%s696_s2] sm:$0xff]  ;;  %v229_v3 = vadd.f32 %v354_v0, %v222_v1  ;;  %s246_s18 = scalar_lea.hbm %s697_s3, %s356_s10  ;;  %s234_s19 = scalar_lea.sflag [#allocation4], %s639_s22 }
  0x2d   : > { %s449_s21 = scalar_lea.vmem %s249_s9, 128  ;;  %s532_s28 = smov [#allocation5]  }
  0x2e   : > { %v231_v4 = vadd.f32 %v230_v2, %v229_v3  ;;  %p450_p8 = scmp.ne.s32.totalorder %s249_s9, %s449_s21  ;;  %s453_s29 = sshll.u32 %s532_s28, 4  ;;  %s454_s29 = int_to_ptr.vmem [resolvable:$false] %s453_s29 }
  0x2f   : > { %s455_s23 = scalar_lea.vmem %s454_s29, 256  ;;  %p456_p0 = scmp.lt.s32.totalorder %s249_s9, %s454_s29 }
  0x30   : > { %232 = vst [vmem:[%s215_s8] sm:$0xff] %v231_v4  ;;  %p451_p11 = pnand %p450_p8, %p604_p9  ;;  %p457_p1 = scmp.lt.s32.totalorder %s455_s23, %s449_s21 }
  0x32   : > { %p452_p12 = pneg %p451_p11  ;;  %p458_p2 = por %p457_p1, %p456_p0 }
  0x34   : > { %p459_p3 = pnand %p458_p2, %p452_p12 }
  0x36   : > { %462 = shalt.err (!%p459_p3)
}
  0x37   : > { %s463_s15 = scalar_lea.hbm %s246_s18, 128  ;;  %s467_s4 = scalar_lea.hbm %s697_s3, 256 }
  0x38   : > { %p464_p5 = scmp.ne.s32.totalorder %s246_s18, %s463_s15  ;;  %p468_p10 = scmp.lt.s32.totalorder %s246_s18, %s697_s3 }
  0x39   : > { %p469_p4 = scmp.lt.s32.totalorder %s467_s4, %s463_s15 }
  0x3a   : > { %p465_p6 = pnand %p464_p5, %p604_p9 }
  0x3b   : > { %p470_p13 = por %p469_p4, %p468_p10 }
  0x3c   : > { %p466_p7 = pneg %p465_p6 }
  0x3e   : > { %p471_p8 = pnand %p470_p13, %p466_p7 }
  0x40   : > { %474 = shalt.err (!%p471_p8)
}
  0x41   : > { %361 = dma.vmem_to_hbm [thread:$0]  (%p604_p9), %s249_s9, 128, %s246_s18, %s234_s19  }
  0x42 PF: > { %s260_s7 = sand.u32 1, %s509_s12   ;;  %p703_p11 = scmp.ne.s32.totalorder %s701_s27, 0 }
  0x43   : > { %p704_p12 = scmp.ge.s32.totalorder %s529_s17, 2  ;;  %s261_s8 = scalar_lea.sflag [#allocation4], %s260_s7 }
  0x45   : > { %p368_p0 = pnand %p704_p12, %p703_p11 }
  0x47   : > { %p369_p1 = pneg %p368_p0 }
  0x49   : > { %504 = dma.done.wait (%p369_p1), %s261_s8, 128  }
  0x4a   : > { %506 = vsyncadd (%p369_p1), %s261_s8, 4294967168  ;;  %s19_s17 = sadd.s32 1, %s529_s17   ;;  %s705_s12 = smov %s513_s13 }
  0x4b   : > { %p16_p2 = scmp.ge.s32.totalorder %s19_s17, 4   ;;  %s706_s13 = smov %s517_s14 }
  0x4c   : > { %s707_s14 = smov %s609_s26  ;;  %s708_s15 = smov %s525_s16 }
  0x4d   : > { %s709_s16 = smov %s711_s20  ;;  %18 = sbr.rel (!%p16_p2) target bundleno = 6 (0x6), region = 81 }
  0x52   :  { %266 = vsyncpa [#allocation3], 1 }
  0x53   :  { %268 = vsyncpa [#allocation3 + $0x1], 1 }
  0x54   :  { %269 = vsyncpa [#allocation4], 1 }
  0x55   :  { %271 = vsyncpa [#allocation4 + $0x1], 1 }

</bundles_post_ra>
